<compile_context>
chip_gen: v7x
topology: tpu7x:2x2x1
jax: 0.10.0
libtpu: 0.0.40
codegen_flags: <defaults>
</compile_context>

<pallas_src>
import jax
import jax.numpy as jnp
from jax.experimental import pallas as pl
from jax.experimental.pallas import tpu as pltpu

EPS = 1e-5                           # PyTorch BatchNorm2d default eps
VMEM_LIMIT = 32 * 1024 * 1024        # scoped VMEM limit (well under v7x's 64 MiB)
MAX_TILE_P = 1024                    # hard cap on pooling windows per grid step
X_BLOCK_BUDGET = 8 * 1024 * 1024     # VMEM budget for the double-buffered x block


def _round_up(x, m):
    return ((x + m - 1) // m) * m


def _pick_tile_p(np_rows, cin):
    """Pooling windows per grid step: as large as the VMEM budget allows, multiple of 8."""
    # x block is (4, tile_p, cin) f32, double-buffered by the Pallas pipeline.
    cap = max(8, X_BLOCK_BUDGET // (4 * cin * 4 * 2))
    tile = min(MAX_TILE_P, cap)
    if tile >= np_rows:
        return _round_up(max(np_rows, 1), 8)   # single grid step
    return max(8, (tile // 8) * 8)


def bn_stats_kernel(x_ref, sum_ref, sumsq_ref):
    """Accumulate per-channel sum and sum-of-squares across the row-tile grid."""
    @pl.when(pl.program_id(0) == 0)
    def _():
        sum_ref[...] = jnp.zeros_like(sum_ref)
        sumsq_ref[...] = jnp.zeros_like(sumsq_ref)

    x = x_ref[...].astype(jnp.float32)                    # (4, tile_p, cin)
    # Fold the 4 window planes with cheap VPU adds (major-axis slices, no relayout),
    # then a single cross-sublane reduction per quantity.
    xs = x[0] + x[1] + x[2] + x[3]                        # (tile_p, cin)
    xsq = x[0] * x[0] + x[1] * x[1] + x[2] * x[2] + x[3] * x[3]
    sum_ref[...] += jnp.sum(xs, axis=0, keepdims=True)    # (1, cin)
    sumsq_ref[...] += jnp.sum(xsq, axis=0, keepdims=True)


def transition_apply_kernel(x_ref, scale_ref, shift_ref, w_ref, out_ref):
    """Fused BN-apply + ReLU + 2x2 avg-pool + 1x1 conv (bf16 MXU matmul)."""
    scale = scale_ref[...]                                # (1, cin) f32
    shift = shift_ref[...]
    x = x_ref[...].astype(jnp.float32)                    # (4, tile_p, cin)

    def bn_relu(k):
        return jnp.maximum(x[k] * scale + shift, 0.0)     # (tile_p, cin)

    # AvgPool2d(2,2): mean of the 4 window planes (pure VPU adds, channels on lanes).
    pooled = (bn_relu(0) + bn_relu(1) + bn_relu(2) + bn_relu(3)) * 0.25
    # 1x1 conv == channel matmul; bf16 operands, f32 accumulation on the MXU.
    z = jnp.dot(pooled.astype(jnp.bfloat16), w_ref[...],
                preferred_element_type=jnp.float32)       # (tile_p, cout)
    out_ref[...] = z.astype(out_ref.dtype)


def transition_layer(x_nchw, gamma, beta, conv_w):
    """Forward of TransitionLayer. x_nchw: (N, Cin, H, W) -> (N, Cout, H//2, W//2)."""
    n, cin, h, w = x_nchw.shape
    cout = conv_w.shape[0]
    assert h % 2 == 0 and w % 2 == 0, "AvgPool2d(2,2) with odd H/W not supported here"
    ho, wo = h // 2, w // 2
    np_rows = n * ho * wo            # number of 2x2 pooling windows
    r_total = n * h * w              # BN reduction count (N*H*W)

    # Layout glue (XLA fuses the chain into one transpose pass):
    # NCHW -> (dh, dw, N, Ho, Wo, C) -> (4, N*Ho*Wo, Cin); channels stay on lanes and
    # every window plane is a clean (tile_p, Cin) tile (no sublane padding).
    x_win = (jnp.transpose(x_nchw, (0, 2, 3, 1))          # NHWC
             .reshape(n, ho, 2, wo, 2, cin)
             .transpose(2, 4, 0, 1, 3, 5)
             .reshape(4, np_rows, cin))

    tile_p = _pick_tile_p(np_rows, cin)
    num_tiles = pl.cdiv(np_rows, tile_p)
    np_pad = num_tiles * tile_p
    if np_pad != np_rows:
        # Zero rows contribute nothing to sum / sumsq; we divide by the true r_total.
        x_win = jnp.pad(x_win, ((0, 0), (0, np_pad - np_rows), (0, 0)))

    # ---- Pass 1: streaming per-channel batch statistics --------------------------
    sums, sumsqs = pl.pallas_call(
        bn_stats_kernel,
        out_shape=(jax.ShapeDtypeStruct((1, cin), jnp.float32),
                   jax.ShapeDtypeStruct((1, cin), jnp.float32)),
        grid_spec=pltpu.PrefetchScalarGridSpec(
            num_scalar_prefetch=0,
            grid=(num_tiles,),
            in_specs=[pl.BlockSpec((4, tile_p, cin), lambda i: (0, i, 0))],
            out_specs=[pl.BlockSpec((1, cin), lambda i: (0, 0)),
                       pl.BlockSpec((1, cin), lambda i: (0, 0))]),
        compiler_params=pltpu.CompilerParams(
            dimension_semantics=("arbitrary",),            # reduction axis
            vmem_limit_bytes=VMEM_LIMIT),
    )(x_win)

    # Tiny per-channel finalize in XLA: fold the BN affine into scale/shift.
    # NOTE: E[x^2] - mean^2 in f32 can lose precision when |mean| >> std; acceptable
    # for BN tolerances (a two-pass/Welford scheme would be the stricter alternative).
    mean = sums / r_total
    var = jnp.maximum(sumsqs / r_total - mean * mean, 0.0)
    inv_std = jax.lax.rsqrt(var + EPS)
    scale = gamma.reshape(1, cin).astype(jnp.float32) * inv_std
    shift = beta.reshape(1, cin).astype(jnp.float32) - mean * scale

    # Conv weight (Cout, Cin, 1, 1) -> (Cin, Cout), cast once to bf16 for the MXU.
    w2d = conv_w.reshape(cout, cin).T.astype(jnp.bfloat16)

    # ---- Pass 2: fused apply + ReLU + pool + 1x1 conv ------------------------------
    out_rows = pl.pallas_call(
        transition_apply_kernel,
        out_shape=jax.ShapeDtypeStruct((np_pad, cout), x_nchw.dtype),
        grid_spec=pltpu.PrefetchScalarGridSpec(
            num_scalar_prefetch=0,
            grid=(num_tiles,),
            in_specs=[pl.BlockSpec((4, tile_p, cin), lambda i: (0, i, 0)),
                      pl.BlockSpec((1, cin), lambda i: (0, 0)),
                      pl.BlockSpec((1, cin), lambda i: (0, 0)),
                      pl.BlockSpec((cin, cout), lambda i: (0, 0))],
            out_specs=pl.BlockSpec((tile_p, cout), lambda i: (i, 0))),
        compiler_params=pltpu.CompilerParams(
            dimension_semantics=("parallel",),             # independent row tiles
            vmem_limit_bytes=VMEM_LIMIT),
    )(x_win, scale, shift, w2d)

    out_rows = out_rows[:np_rows]
    return jnp.transpose(out_rows.reshape(n, ho, wo, cout), (0, 3, 1, 2))


def transition_layer_reference(x_nchw, gamma, beta, conv_w):
    """Pure-JAX reference mirroring the PyTorch forward (training-mode BN)."""
    n, cin, h, w = x_nchw.shape
    cout = conv_w.shape[0]
    mean = jnp.mean(x_nchw, axis=(0, 2, 3), keepdims=True)
    var = jnp.mean((x_nchw - mean) ** 2, axis=(0, 2, 3), keepdims=True)
    y = (x_nchw - mean) * jax.lax.rsqrt(var + EPS)
    y = y * gamma.reshape(1, cin, 1, 1) + beta.reshape(1, cin, 1, 1)
    y = jnp.maximum(y, 0.0)
    z = jnp.einsum("nchw,oc->nohw", y, conv_w.reshape(cout, cin))
    z = z.reshape(n, cout, h // 2, 2, w // 2, 2).mean(axis=(3, 5))
    return z


if __name__ == "__main__":
    key = jax.random.PRNGKey(0)
    k1, k2, k3, k4 = jax.random.split(key, 4)

    N, Cin, H, W = 2, 8, 16, 16
    Cout = 4

    x = jax.random.normal(k1, (N, Cin, H, W), dtype=jnp.float32)
    # BatchNorm2d params (shape (Cin,)); deterministic, non-trivial init
    gamma = 1.0 + 0.1 * jax.random.normal(k2, (Cin,), dtype=jnp.float32)
    beta = 0.1 * jax.random.normal(k3, (Cin,), dtype=jnp.float32)
    # Conv2d(Cin, Cout, kernel_size=1, bias=False) weight: (Cout, Cin, 1, 1)
    conv_w = jax.random.normal(k4, (Cout, Cin, 1, 1), dtype=jnp.float32) / jnp.sqrt(Cin)

    out = jax.block_until_ready(transition_layer(x, gamma, beta, conv_w))
    assert out.shape == (N, Cout, H // 2, W // 2), out.shape

    ref = jax.block_until_ready(transition_layer_reference(x, gamma, beta, conv_w))
    assert jnp.allclose(out, ref, rtol=2e-2, atol=2e-2), "mismatch vs reference"

    print("KERNEL_OK")
</pallas_src>

<mosaic_0001>
module attributes {stable_mosaic.version = 11 : i64} {
  func.func @bn_stats_kernel(%arg0: i32, %arg1: memref<4x128x8xf32, #tpu.memory_space<vmem>>, %arg2: memref<1x8xf32, #tpu.memory_space<vmem>>, %arg3: memref<1x8xf32, #tpu.memory_space<vmem>>) attributes {dimension_semantics = [#tpu.dimension_semantics<arbitrary>], iteration_bounds = array<i64: 1>, scalar_prefetch = 0 : i64, scratch_operands = 0 : i64, tpu.core_type = #tpu.core_type<tc>, window_params = [{transform_indices = @transform_0, window_bounds = array<i64: 4, 128, 8>}, {pipeline_mode = #tpu.pipeline_mode<synchronous>, transform_indices = @transform_1, window_bounds = array<i64: 1, 8>}, {pipeline_mode = #tpu.pipeline_mode<synchronous>, transform_indices = @transform_2, window_bounds = array<i64: 1, 8>}]} {
    %c0_i32 = arith.constant 0 : i32
    %0 = arith.cmpi eq, %arg0, %c0_i32 : i32
    %1 = arith.extui %0 : i1 to i32
    %c0_i32_0 = arith.constant 0 : i32
    %2 = arith.cmpi ne, %1, %c0_i32_0 : i32
    scf.if %2 {
      %cst_12 = arith.constant 0.000000e+00 : f32
      %48 = vector.broadcast %cst_12 : f32 to vector<1x8xf32>
      %c0_13 = arith.constant 0 : index
      %c0_14 = arith.constant 0 : index
      %49 = vector.load %arg2[%c0_13, %c0_14] : memref<1x8xf32, #tpu.memory_space<vmem>>, vector<1x8xf32>
      tpu.vector_store %arg2[%c0_13, %c0_14], %48 {strides = array<i32>} : memref<1x8xf32, #tpu.memory_space<vmem>>, vector<1x8xf32>,
      %cst_15 = arith.constant 0.000000e+00 : f32
      %50 = vector.broadcast %cst_15 : f32 to vector<1x8xf32>
      %c0_16 = arith.constant 0 : index
      %c0_17 = arith.constant 0 : index
      %51 = vector.load %arg3[%c0_16, %c0_17] : memref<1x8xf32, #tpu.memory_space<vmem>>, vector<1x8xf32>
      tpu.vector_store %arg3[%c0_16, %c0_17], %50 {strides = array<i32>} : memref<1x8xf32, #tpu.memory_space<vmem>>, vector<1x8xf32>,
    } else {
    }
    %c0 = arith.constant 0 : index
    %c0_1 = arith.constant 0 : index
    %c0_2 = arith.constant 0 : index
    %3 = vector.load %arg1[%c0, %c0_1, %c0_2] : memref<4x128x8xf32, #tpu.memory_space<vmem>>, vector<4x128x8xf32>
    %4 = vector.extract_strided_slice %3 {offsets = [0, 0, 0], sizes = [1, 128, 8], strides = [1, 1, 1]} : vector<4x128x8xf32> to vector<1x128x8xf32>
    %5 = vector.shape_cast %4 : vector<1x128x8xf32> to vector<128x8xf32>
    %6 = vector.extract_strided_slice %3 {offsets = [1, 0, 0], sizes = [1, 128, 8], strides = [1, 1, 1]} : vector<4x128x8xf32> to vector<1x128x8xf32>
    %7 = vector.shape_cast %6 : vector<1x128x8xf32> to vector<128x8xf32>
    %8 = arith.addf %5, %7 : vector<128x8xf32>
    %9 = vector.extract_strided_slice %3 {offsets = [2, 0, 0], sizes = [1, 128, 8], strides = [1, 1, 1]} : vector<4x128x8xf32> to vector<1x128x8xf32>
    %10 = vector.shape_cast %9 : vector<1x128x8xf32> to vector<128x8xf32>
    %11 = arith.addf %8, %10 : vector<128x8xf32>
    %12 = vector.extract_strided_slice %3 {offsets = [3, 0, 0], sizes = [1, 128, 8], strides = [1, 1, 1]} : vector<4x128x8xf32> to vector<1x128x8xf32>
    %13 = vector.shape_cast %12 : vector<1x128x8xf32> to vector<128x8xf32>
    %14 = arith.addf %11, %13 : vector<128x8xf32>
    %15 = vector.extract_strided_slice %3 {offsets = [0, 0, 0], sizes = [1, 128, 8], strides = [1, 1, 1]} : vector<4x128x8xf32> to vector<1x128x8xf32>
    %16 = vector.shape_cast %15 : vector<1x128x8xf32> to vector<128x8xf32>
    %17 = vector.extract_strided_slice %3 {offsets = [0, 0, 0], sizes = [1, 128, 8], strides = [1, 1, 1]} : vector<4x128x8xf32> to vector<1x128x8xf32>
    %18 = vector.shape_cast %17 : vector<1x128x8xf32> to vector<128x8xf32>
    %19 = arith.mulf %16, %18 : vector<128x8xf32>
    %20 = vector.extract_strided_slice %3 {offsets = [1, 0, 0], sizes = [1, 128, 8], strides = [1, 1, 1]} : vector<4x128x8xf32> to vector<1x128x8xf32>
    %21 = vector.shape_cast %20 : vector<1x128x8xf32> to vector<128x8xf32>
    %22 = vector.extract_strided_slice %3 {offsets = [1, 0, 0], sizes = [1, 128, 8], strides = [1, 1, 1]} : vector<4x128x8xf32> to vector<1x128x8xf32>
    %23 = vector.shape_cast %22 : vector<1x128x8xf32> to vector<128x8xf32>
    %24 = arith.mulf %21, %23 : vector<128x8xf32>
    %25 = arith.addf %19, %24 : vector<128x8xf32>
    %26 = vector.extract_strided_slice %3 {offsets = [2, 0, 0], sizes = [1, 128, 8], strides = [1, 1, 1]} : vector<4x128x8xf32> to vector<1x128x8xf32>
    %27 = vector.shape_cast %26 : vector<1x128x8xf32> to vector<128x8xf32>
    %28 = vector.extract_strided_slice %3 {offsets = [2, 0, 0], sizes = [1, 128, 8], strides = [1, 1, 1]} : vector<4x128x8xf32> to vector<1x128x8xf32>
    %29 = vector.shape_cast %28 : vector<1x128x8xf32> to vector<128x8xf32>
    %30 = arith.mulf %27, %29 : vector<128x8xf32>
    %31 = arith.addf %25, %30 : vector<128x8xf32>
    %32 = vector.extract_strided_slice %3 {offsets = [3, 0, 0], sizes = [1, 128, 8], strides = [1, 1, 1]} : vector<4x128x8xf32> to vector<1x128x8xf32>
    %33 = vector.shape_cast %32 : vector<1x128x8xf32> to vector<128x8xf32>
    %34 = vector.extract_strided_slice %3 {offsets = [3, 0, 0], sizes = [1, 128, 8], strides = [1, 1, 1]} : vector<4x128x8xf32> to vector<1x128x8xf32>
    %35 = vector.shape_cast %34 : vector<1x128x8xf32> to vector<128x8xf32>
    %36 = arith.mulf %33, %35 : vector<128x8xf32>
    %37 = arith.addf %31, %36 : vector<128x8xf32>
    %c0_3 = arith.constant 0 : index
    %c0_4 = arith.constant 0 : index
    %38 = vector.load %arg2[%c0_3, %c0_4] : memref<1x8xf32, #tpu.memory_space<vmem>>, vector<1x8xf32>
    %cst = arith.constant dense<0.000000e+00> : vector<8xf32>
    %39 = vector.multi_reduction <add>, %14, %cst [0] : vector<128x8xf32> to vector<8xf32>
    %40 = vector.shape_cast %39 : vector<8xf32> to vector<1x8xf32>
    %41 = arith.addf %38, %40 : vector<1x8xf32>
    %c0_5 = arith.constant 0 : index
    %c0_6 = arith.constant 0 : index
    %42 = vector.load %arg2[%c0_5, %c0_6] : memref<1x8xf32, #tpu.memory_space<vmem>>, vector<1x8xf32>
    tpu.vector_store %arg2[%c0_5, %c0_6], %41 {strides = array<i32>} : memref<1x8xf32, #tpu.memory_space<vmem>>, vector<1x8xf32>,
    %c0_7 = arith.constant 0 : index
    %c0_8 = arith.constant 0 : index
    %43 = vector.load %arg3[%c0_7, %c0_8] : memref<1x8xf32, #tpu.memory_space<vmem>>, vector<1x8xf32>
    %cst_9 = arith.constant dense<0.000000e+00> : vector<8xf32>
    %44 = vector.multi_reduction <add>, %37, %cst_9 [0] : vector<128x8xf32> to vector<8xf32>
    %45 = vector.shape_cast %44 : vector<8xf32> to vector<1x8xf32>
    %46 = arith.addf %43, %45 : vector<1x8xf32>
    %c0_10 = arith.constant 0 : index
    %c0_11 = arith.constant 0 : index
    %47 = vector.load %arg3[%c0_10, %c0_11] : memref<1x8xf32, #tpu.memory_space<vmem>>, vector<1x8xf32>
    tpu.vector_store %arg3[%c0_10, %c0_11], %46 {strides = array<i32>} : memref<1x8xf32, #tpu.memory_space<vmem>>, vector<1x8xf32>,
    return
  }
  func.func @transform_0(%arg0: i32) -> (i32, i32, i32) {
    %c0_i32 = arith.constant 0 : i32
    %c0_i32_0 = arith.constant 0 : i32
    %c0_i32_1 = arith.constant 0 : i32
    return %c0_i32, %arg0, %c0_i32_0 : i32, i32, i32
  }
  func.func @transform_1(%arg0: i32) -> (i32, i32) {
    %c0_i32 = arith.constant 0 : i32
    %c0_i32_0 = arith.constant 0 : i32
    %c0_i32_1 = arith.constant 0 : i32
    return %c0_i32, %c0_i32_0 : i32, i32
  }
  func.func @transform_2(%arg0: i32) -> (i32, i32) {
    %c0_i32 = arith.constant 0 : i32
    %c0_i32_0 = arith.constant 0 : i32
    %c0_i32_1 = arith.constant 0 : i32
    return %c0_i32, %c0_i32_0 : i32, i32
  }
}

</mosaic_0001>

<bundles_post_ra>
// kernel: tpu_custom_call.1
= control target key start
LH: loop header
LB: loop body
LE: loop exit
PB: predicated region body
PF: predicated region fallthrough
CT: control target
= control target key end

     0   :  { %8 = vsyncpa [#allocation3], 0  ;;  %vm16_vm0 = vcmask 57344   ;;  %v404_v0 = vmov 0.0   ;;  %vm244_vm1 = vcmask 64512   ;;  %s983_s0 = inlined_call_operand.vmem [shape: f32[4,128,8], index: 0, kind: input, shape index: {}]   ;;  %s984_s1 = inlined_call_operand.hbm [shape: f32[1,8], index: 1, kind: output, shape index: {0}]   ;;  %s985_s2 = inlined_call_operand.hbm [shape: f32[1,8], index: 2, kind: output, shape index: {1}]  }
   0x1   :  { %17 = vst.msk [vmem:[#allocation2] sm:$0x1] %vm16_vm0, %v404_v0  ;;  %18 = vst.msk [vmem:[#allocation4] sm:$0x1] %vm16_vm0, %v404_v0  ;;  %v19_v1 = vld [vmem:[%s983_s0] sm:$0xff]  ;;  %v20_v2 = vld [vmem:[%s983_s0 + $0x8] sm:$0xff] }
   0x2   :  { %v21_v3 = vld [vmem:[%s983_s0 + $0x10] sm:$0xff]  ;;  %v436_v4 = vld [vmem:[%s983_s0 + $0x80] sm:$0xff]  ;;  %v441_v5 = vld [vmem:[%s983_s0 + $0x88] sm:$0xff]  ;;  %v518_v31 = vmul.f32 %v19_v1, %v19_v1  ;;  %v537_v37 = vmul.f32 %v20_v2, %v20_v2 }
   0x3   :  { %v22_v6 = vld [vmem:[%s983_s0 + $0x18] sm:$0xff]  ;;  %v449_v7 = vld [vmem:[%s983_s0 + $0x90] sm:$0xff]  ;;  %v83_v9 = vadd.f32 %v436_v4, %v19_v1  ;;  %v84_v10 = vadd.f32 %v441_v5, %v20_v2  ;;  %v23_v13 = vld [vmem:[%s983_s0 + $0x20] sm:$0xff]  ;;  %v539_v38 = vmul.f32 %v21_v3, %v21_v3 }
   0x4   :  { %v454_v8 = vld [vmem:[%s983_s0 + $0x98] sm:$0xff]  ;;  %v85_v11 = vadd.f32 %v449_v7, %v21_v3  ;;  %v466_v14 = vld [vmem:[%s983_s0 + $0xa0] sm:$0xff]  ;;  %v24_v15 = vld [vmem:[%s983_s0 + $0x28] sm:$0xff]  ;;  %v558_v44 = vmul.f32 %v22_v6, %v22_v6  ;;  %v560_v45 = vmul.f32 %v23_v13, %v23_v13 }
   0x5   :  { %v86_v12 = vadd.f32 %v454_v8, %v22_v6  ;;  %v474_v16 = vld [vmem:[%s983_s0 + $0x100] sm:$0xff]  ;;  %v479_v17 = vld [vmem:[%s983_s0 + $0x108] sm:$0xff]  ;;  %v87_v18 = vadd.f32 %v466_v14, %v23_v13  ;;  %v490_v20 = vld [vmem:[%s983_s0 + $0x110] sm:$0xff]  ;;  %v591_v57 = vmul.f32 %v24_v15, %v24_v15 }
   0x6   :  { %v485_v19 = vld [vmem:[%s983_s0 + $0xa8] sm:$0xff]  ;;  %v495_v21 = vld [vmem:[%s983_s0 + $0x118] sm:$0xff]  ;;  %v99_v22 = vadd.f32 %v83_v9, %v474_v16  ;;  %v100_v23 = vadd.f32 %v84_v10, %v479_v17  ;;  %v25_v24 = vld [vmem:[%s983_s0 + $0x30] sm:$0xff]  ;;  %v101_v26 = vadd.f32 %v85_v11, %v490_v20 }
   0x7   :  { %v88_v25 = vadd.f32 %v485_v19, %v24_v15  ;;  %v102_v27 = vadd.f32 %v86_v12, %v495_v21  ;;  %v26_v28 = vld [vmem:[%s983_s0 + $0x38] sm:$0xff]  ;;  %v511_v29 = vld [vmem:[%s983_s0 + $0xb0] sm:$0xff]  ;;  %v516_v30 = vld [vmem:[%s983_s0 + $0x120] sm:$0xff]  ;;  %v593_v58 = vmul.f32 %v25_v24, %v25_v24 }
   0x8   :  { %v523_v32 = vld [vmem:[%s983_s0 + $0xb8] sm:$0xff]  ;;  %v528_v33 = vld [vmem:[%s983_s0 + $0x180] sm:$0xff]  ;;  %v533_v34 = vld [vmem:[%s983_s0 + $0x188] sm:$0xff]  ;;  %v89_v35 = vadd.f32 %v511_v29, %v25_v24  ;;  %v103_v36 = vadd.f32 %v87_v18, %v516_v30  ;;  %v595_v59 = vmul.f32 %v26_v28, %v26_v28 }
   0x9   :  { %v544_v39 = vld [vmem:[%s983_s0 + $0x128] sm:$0xff]  ;;  %v549_v40 = vld [vmem:[%s983_s0 + $0x190] sm:$0xff]  ;;  %v554_v41 = vld [vmem:[%s983_s0 + $0x198] sm:$0xff]  ;;  %v115_v42 = vadd.f32 %v99_v22, %v528_v33  ;;  %v116_v43 = vadd.f32 %v100_v23, %v533_v34  ;;  %v90_v49 = vadd.f32 %v523_v32, %v26_v28 }
   0xa   :  { %v27_v46 = vld [vmem:[%s983_s0 + $0x40] sm:$0xff]  ;;  %v28_v47 = vld [vmem:[%s983_s0 + $0x48] sm:$0xff]  ;;  %v29_v48 = vld [vmem:[%s983_s0 + $0x50] sm:$0xff]  ;;  %v104_v50 = vadd.f32 %v88_v25, %v544_v39  ;;  %v117_v51 = vadd.f32 %v101_v26, %v549_v40  ;;  %v118_v52 = vadd.f32 %v102_v27, %v554_v41 }
   0xb   :  { %v578_v53 = vld [vmem:[%s983_s0 + $0xc0] sm:$0xff]  ;;  %v583_v54 = vld [vmem:[%s983_s0 + $0x130] sm:$0xff]  ;;  %v245_v56 = vsel %vm244_vm1, %v115_v42, 0.0  ;;  %v30_v60 = vld [vmem:[%s983_s0 + $0x58] sm:$0xff]  ;;  %v246_v2 = vsel %vm244_vm1, %v116_v43, 0.0  ;;  %v626_v12 = vmul.f32 %v27_v46, %v27_v46  ;;  %v628_v13 = vmul.f32 %v28_v47, %v28_v47 }
   0xc   :  { %v588_v55 = vld [vmem:[%s983_s0 + $0x1a0] sm:$0xff]  ;;  %v606_v62 = vld [vmem:[%s983_s0 + $0xc8] sm:$0xff]  ;;  %v91_v63 = vadd.f32 %v578_v53, %v27_v46  ;;  %v105_v0 = vadd.f32 %v89_v35, %v583_v54  ;;  %v618_v6 = vld [vmem:[%s983_s0 + $0x138] sm:$0xff]  ;;  %v247_v11 = vadd.f32 %v246_v2, %v245_v56  ;;  %v248_v24 = vsel %vm244_vm1, %v117_v51, 0.0 }
   0xd   :  { %v31_v61 = vld [vmem:[%s983_s0 + $0x60] sm:$0xff]  ;;  %v119_v1 = vadd.f32 %v103_v36, %v588_v55  ;;  %v32_v3 = vld [vmem:[%s983_s0 + $0x68] sm:$0xff]  ;;  %v92_v10 = vadd.f32 %v606_v62, %v28_v47  ;;  %996 = vst [vmem:[#allocation8_spill] sm:$0xff] %v628_v13  ;;  %v33_v15 = vld [vmem:[%s983_s0 + $0x70] sm:$0xff]  ;;  %v106_v22 = vadd.f32 %v90_v49, %v618_v6  ;;  %v250_v25 = vsel %vm244_vm1, %v118_v52, 0.0 }
   0xe   :  { %v623_v9 = vld [vmem:[%s983_s0 + $0x1a8] sm:$0xff]  ;;  %v34_v18 = vld [vmem:[%s983_s0 + $0x78] sm:$0xff] }
   0xf   :  { %v120_v23 = vadd.f32 %v104_v50, %v623_v9 }
  0x10   :  { %9 = vsyncpa [#allocation5], 0  ;;  %v643_v26 = vld [vmem:[%s983_s0 + $0xd0] sm:$0xff]  ;;  %v648_v27 = vld [vmem:[%s983_s0 + $0x140] sm:$0xff]  ;;  %v249_v35 = vadd.f32 %v248_v24, %v247_v11  ;;  %v655_v36 = vmul.f32 %v29_v48, %v29_v48  ;;  %v657_v42 = vmul.f32 %v30_v60, %v30_v60  ;;  %v659_v43 = vmul.f32 %v31_v61, %v31_v61 }
  0x11   :  { %v653_v28 = vld [vmem:[%s983_s0 + $0x1b0] sm:$0xff]  ;;  %v93_v46 = vadd.f32 %v643_v26, %v29_v48  ;;  %v107_v47 = vadd.f32 %v91_v63, %v648_v27  ;;  %v252_v50 = vsel %vm244_vm1, %v119_v1, 0.0  ;;  %v668_v51 = vld [vmem:[%s983_s0 + $0xd8] sm:$0xff]  ;;  %v673_v52 = vld [vmem:[%s983_s0 + $0x148] sm:$0xff]  ;;  %v680_v63 = vmul.f32 %v32_v3, %v32_v3 }
  0x12   :  { %997 = vst [vmem:[#allocation9_spill] sm:$0xff] %v653_v28  ;;  %998 = vst [vmem:[#allocation10_spill] sm:$0xff] %v655_v36  ;;  %v121_v49 = vadd.f32 %v105_v0, %v653_v28  ;;  %v678_v48 = vld [vmem:[%s983_s0 + $0x1b8] sm:$0xff]  ;;  %v251_v56 = vadd.f32 %v250_v25, %v249_v35  ;;  %v682_v0 = vmul.f32 %v33_v15, %v33_v15  ;;  %v689_v2 = vld [vmem:[%s983_s0 + $0xe0] sm:$0xff] }
  0x13   :  { %999 = vst [vmem:[#allocation11_spill] sm:$0xff] %v657_v42  ;;  %1000 = vst [vmem:[#allocation12_spill] sm:$0xff] %v659_v43  ;;  %v684_v1 = vmul.f32 %v34_v18, %v34_v18  ;;  %v694_v11 = vld [vmem:[%s983_s0 + $0xe8] sm:$0xff]  ;;  %v94_v24 = vadd.f32 %v668_v51, %v30_v60  ;;  %v108_v25 = vadd.f32 %v92_v10, %v673_v52  ;;  %v713_v60 = vld [vmem:[%s983_s0 + $0x1c0] sm:$0xff] }
  0x14   :  { %1001 = vst [vmem:[#allocation13_spill] sm:$0xff] %v673_v52  ;;  %1002 = vst [vmem:[#allocation14_spill] sm:$0xff] %v678_v48  ;;  %v122_v35 = vadd.f32 %v106_v22, %v678_v48  ;;  %v95_v10 = vadd.f32 %v689_v2, %v31_v61  ;;  %v96_v22 = vadd.f32 %v694_v11, %v32_v3  ;;  %v256_v52 = vsel %vm244_vm1, %v121_v49, 0.0  ;;  %v726_v13 = vld [vmem:[%s983_s0 + $0xf8] sm:$0xff]  ;;  %v747_v49 = vld [vmem:[%s983_s0 + $0x160] sm:$0xff] }
  0x15   :  { %1003 = vst [vmem:[#allocation15_spill] sm:$0xff] %v680_v63  ;;  %1004 = vst [vmem:[#allocation16_spill] sm:$0xff] %v682_v0  ;;  %v254_v0 = vsel %vm244_vm1, %v120_v23, 0.0  ;;  %v708_v63 = vld [vmem:[%s983_s0 + $0x150] sm:$0xff]  ;;  %v253_v23 = vadd.f32 %v252_v50, %v251_v56  ;;  %v147_v43 = vmul.f32 %v436_v4, %v436_v4  ;;  %v123_v48 = vadd.f32 %v107_v47, %v713_v60  ;;  %v731_v61 = vld [vmem:[%s983_s0 + $0x158] sm:$0xff] }
  0x16   :  { %1005 = vst [vmem:[#allocation17_spill] sm:$0xff] %v684_v1  ;;  %v703_v1 = vld [vmem:[%s983_s0 + $0xf0] sm:$0xff]  ;;  %1006 = vst [vmem:[#allocation18_spill] sm:$0xff] %v708_v63  ;;  %v109_v36 = vadd.f32 %v93_v46, %v708_v63  ;;  %v736_v4 = vld [vmem:[%s983_s0 + $0x1c8] sm:$0xff]  ;;  %v149_v46 = vmul.f32 %v449_v7, %v449_v7  ;;  %v150_v47 = vmul.f32 %v454_v8, %v454_v8  ;;  %v258_v7 = vsel %vm244_vm1, %v122_v35, 0.0 }
  0x17   :  { %1007 = vst [vmem:[#allocation19_spill] sm:$0xff] %v713_v60  ;;  %v97_v42 = vadd.f32 %v703_v1, %v33_v15  ;;  %1008 = vst [vmem:[#allocation20_spill] sm:$0xff] %v731_v61  ;;  %v255_v3 = vadd.f32 %v254_v0, %v253_v23  ;;  %v148_v15 = vmul.f32 %v441_v5, %v441_v5  ;;  %v752_v50 = vld [vmem:[%s983_s0 + $0x168] sm:$0xff]  ;;  %v761_v8 = vld [vmem:[%s983_s0 + $0x170] sm:$0xff] }
  0x18   :  { %1009 = vst [vmem:[#allocation21_spill] sm:$0xff] %v736_v4  ;;  %v98_v56 = vadd.f32 %v726_v13, %v34_v18  ;;  %v110_v5 = vadd.f32 %v94_v24, %v731_v61  ;;  %v124_v0 = vadd.f32 %v108_v25, %v736_v4  ;;  %1010 = vst [vmem:[#allocation22_spill] sm:$0xff] %v761_v8  ;;  %v766_v23 = vld [vmem:[%s983_s0 + $0x1d0] sm:$0xff]  ;;  %v260_v4 = vsel %vm244_vm1, %v123_v48, 0.0  ;;  %v780_v28 = vld [vmem:[%s983_s0 + $0x178] sm:$0xff] }
  0x19   :  { %v111_v60 = vadd.f32 %v95_v10, %v747_v49  ;;  %v112_v18 = vadd.f32 %v96_v22, %v752_v50  ;;  %v257_v63 = vadd.f32 %v256_v52, %v255_v3  ;;  %v151_v24 = vmul.f32 %v466_v14, %v466_v14  ;;  %1011 = vst [vmem:[#allocation23_spill] sm:$0xff] %v780_v28  ;;  %v785_v52 = vld [vmem:[%s983_s0 + $0x1d8] sm:$0xff]  ;;  %v796_v48 = vld [vmem:[%s983_s0 + $0x1e0] sm:$0xff]  ;;  %v801_v10 = vld [vmem:[%s983_s0 + $0x1e8] sm:$0xff] }
  0x1a   :  { %v113_v25 = vadd.f32 %v97_v42, %v761_v8  ;;  %v125_v35 = vadd.f32 %v109_v36, %v766_v23  ;;  %v152_v61 = vmul.f32 %v485_v19, %v485_v19  ;;  %1012 = vst [vmem:[#allocation24_spill] sm:$0xff] %v785_v52  ;;  %v153_v42 = vmul.f32 %v511_v29, %v511_v29 }
  0x1b   :  { %v259_v14 = vadd.f32 %v258_v7, %v257_v63  ;;  %v154_v36 = vmul.f32 %v523_v32, %v523_v32  ;;  %v155_v19 = vmul.f32 %v578_v53, %v578_v53  ;;  %v114_v63 = vadd.f32 %v98_v56, %v780_v28  ;;  %v813_v53 = vld [vmem:[%s983_s0 + $0x1f0] sm:$0xff] }
  0x1c   :  { %v126_v29 = vadd.f32 %v110_v5, %v785_v52  ;;  %v262_v22 = vsel %vm244_vm1, %v124_v0, 0.0  ;;  %v808_v32 = vmul.f32 %v606_v62, %v606_v62  ;;  %v127_v3 = vadd.f32 %v111_v60, %v796_v48 }
  0x1d   :  { %v128_v7 = vadd.f32 %v112_v18, %v801_v10  ;;  %v261_v8 = vadd.f32 %v260_v4, %v259_v14  ;;  %v819_v56 = vmul.f32 %v643_v26, %v643_v26  ;;  %v129_v5 = vadd.f32 %v113_v25, %v813_v53  ;;  %v836_v18 = vld [vmem:[%s983_s0 + $0x1f8] sm:$0xff]  ;;  %s405_s0 = smov [#allocation2]  }
  0x1e   :  { %v264_v0 = vsel %vm244_vm1, %v125_v35, 0.0  ;;  %v825_v62 = vmul.f32 %v668_v51, %v668_v51  ;;  %v163_v28 = vadd.f32 %v147_v43, %v518_v31  ;;  %v164_v60 = vadd.f32 %v148_v15, %v537_v37  ;;  %s331_s25 = sshll.u32 %s405_s0, 4  ;;  %s332_s25 = int_to_ptr.vmem [resolvable:$true] %s331_s25 }
  0x1f   :  { %v263_v52 = vadd.f32 %v262_v22, %v261_v8  ;;  %v179_v4 = vmul.f32 %v474_v16, %v474_v16  ;;  %v180_v26 = vmul.f32 %v479_v17, %v479_v17  ;;  %v266_v25 = vsel %vm244_vm1, %v126_v29, 0.0  ;;  %s356_s26 = scalar_lea.vmem %s332_s25, 16  ;;  %s360_s27 = scalar_lea.vmem %s332_s25, 32 }
  0x20   :  { %v841_v51 = vmul.f32 %v689_v2, %v689_v2  ;;  %v165_v31 = vadd.f32 %v149_v46, %v539_v38  ;;  %v181_v37 = vmul.f32 %v490_v20, %v490_v20  ;;  %v130_v16 = vadd.f32 %v114_v63, %v836_v18  ;;  %p357_p0 = scmp.ne.s32.totalorder %s332_s25, %s356_s26  ;;  %p361_p1 = scmp.lt.s32.totalorder %s332_s25, %s332_s25 }
  0x21   :  { %v265_v43 = vadd.f32 %v264_v0, %v263_v52  ;;  %v268_v17 = vsel %vm244_vm1, %v127_v3, 0.0  ;;  %v270_v15 = vsel %vm244_vm1, %v128_v7, 0.0  ;;  %v272_v8 = vsel %vm244_vm1, %v129_v5, 0.0  ;;  %p362_p2 = scmp.lt.s32.totalorder %s360_s27, %s356_s26 }
  0x22   :  { %v166_v35 = vadd.f32 %v150_v47, %v558_v44  ;;  %v167_v14 = vadd.f32 %v151_v24, %v560_v45  ;;  %v182_v2 = vmul.f32 %v495_v21, %v495_v21  ;;  %v183_v20 = vmul.f32 %v516_v30, %v516_v30 }
  0x23   :  { %v267_v38 = vadd.f32 %v266_v25, %v265_v43  ;;  %v195_v46 = vadd.f32 %v179_v4, %v163_v28  ;;  %v196_v63 = vadd.f32 %v180_v26, %v164_v60  ;;  %v197_v52 = vadd.f32 %v181_v37, %v165_v31  ;;  %v1013_v31 = vld [vmem:[#allocation9_spill] sm:$0xff]  ;;  %p363_p3 = por %p362_p2, %p361_p1 }
  0x24   :  { %v211_v29 = vmul.f32 %v528_v33, %v528_v33  ;;  %v212_v22 = vmul.f32 %v533_v34, %v533_v34  ;;  %v213_v44 = vmul.f32 %v549_v40, %v549_v40  ;;  %v274_v47 = vsel %vm244_vm1, %v130_v16, 0.0  ;;  %v1015_v16 = vld [vmem:[#allocation13_spill] sm:$0xff] }
  0x25   :  { %v269_v45 = vadd.f32 %v268_v17, %v267_v38  ;;  %v865_v21 = vmul.f32 %v694_v11, %v694_v11  ;;  %v869_v30 = vmul.f32 %v703_v1, %v703_v1  ;;  %v168_v28 = vadd.f32 %v152_v61, %v591_v57  ;;  %v1017_v38 = vld [vmem:[#allocation10_spill] sm:$0xff]  ;;  %p364_p4 = pnand %p363_p3, %p357_p0 }
  0x26   :  { %v184_v33 = vmul.f32 %v544_v39, %v544_v39  ;;  %v198_v34 = vadd.f32 %v182_v2, %v166_v35  ;;  %v214_v40 = vmul.f32 %v554_v41, %v554_v41  ;;  %v169_v3 = vadd.f32 %v153_v42, %v593_v58 }
  0x27   :  { %v271_v24 = vadd.f32 %v270_v15, %v269_v45  ;;  %v185_v11 = vmul.f32 %v583_v54, %v583_v54  ;;  %v199_v7 = vadd.f32 %v183_v20, %v167_v14  ;;  %v215_v1 = vmul.f32 %v588_v55, %v588_v55  ;;  %v1016_v15 = vld [vmem:[#allocation14_spill] sm:$0xff] }
  0x28   :  { %v227_v5 = vadd.f32 %v211_v29, %v195_v46  ;;  %v228_v0 = vadd.f32 %v212_v22, %v196_v63  ;;  %v229_v57 = vadd.f32 %v213_v44, %v197_v52  ;;  %v883_v39 = vmul.f32 %v726_v13, %v726_v13  ;;  %v1018_v46 = vld [vmem:[#allocation18_spill] sm:$0xff]  ;;  %v1019_v29 = vld [vmem:[#allocation19_spill] sm:$0xff] }
  0x29   :  { %v273_v61 = vadd.f32 %v272_v8, %v271_v24  ;;  %v170_v41 = vadd.f32 %v154_v36, %v595_v59  ;;  %v171_v60 = vadd.f32 %v155_v19, %v626_v12  ;;  %v186_v58 = vmul.f32 %v618_v6, %v618_v6  ;;  %v1014_v19 = vld [vmem:[#allocation8_spill] sm:$0xff] }
  0x2a   :  { %v200_v54 = vadd.f32 %v184_v33, %v168_v28  ;;  %v216_v42 = vmul.f32 %v623_v9, %v623_v9  ;;  %v230_v55 = vadd.f32 %v214_v40, %v198_v34  ;;  %v187_v26 = vmul.f32 %v648_v27, %v648_v27  ;;  %v1020_v28 = vld [vmem:[#allocation11_spill] sm:$0xff]  ;;  %v1021_v34 = vld [vmem:[#allocation20_spill] sm:$0xff] }
  0x2b   :  { %v275_v4 = vadd.f32 %v274_v47, %v273_v61  ;;  %v201_v25 = vadd.f32 %v185_v11, %v169_v3  ;;  %v217_v13 = vmul.f32 %v1013_v31, %v1013_v31  ;;  %v231_v37 = vadd.f32 %v215_v1, %v199_v7  ;;  %v1022_v3 = vld [vmem:[#allocation21_spill] sm:$0xff] }
  0x2c   :  { %v286_v59 = vsel %vm244_vm1, %v227_v5, 0.0  ;;  %v287_v12 = vsel %vm244_vm1, %v228_v0, 0.0  ;;  %v289_v6 = vsel %vm244_vm1, %v229_v57, 0.0  ;;  %v172_v9 = vadd.f32 %v808_v32, %v1014_v19  ;;  %v1023_v0 = vld [vmem:[#allocation12_spill] sm:$0xff] }
  0x2d   :  { %v276_v36 = vrot.slane %v275_v4, 4  ;;  %v188_v43 = vmul.f32 %v1015_v16, %v1015_v16  ;;  %v288_v17 = vadd.f32 %v287_v12, %v286_v59  ;;  %v202_v27 = vadd.f32 %v186_v58, %v170_v41  ;;  %v1026_v12 = vld [vmem:[#allocation16_spill] sm:$0xff] }
  0x2e   :  { %v218_v8 = vmul.f32 %v1016_v15, %v1016_v15  ;;  %v232_v35 = vadd.f32 %v216_v42, %v200_v54  ;;  %v291_v14 = vsel %vm244_vm1, %v230_v55, 0.0  ;;  %v173_v20 = vadd.f32 %v819_v56, %v1017_v38  ;;  %v1024_v55 = vld [vmem:[#allocation15_spill] sm:$0xff] }
  0x2f   :  { %v277_v2 = vadd.f32 %v276_v36, %v275_v4  ;;  %v189_v63 = vmul.f32 %v1018_v46, %v1018_v46  ;;  %v290_v52 = vadd.f32 %v289_v6, %v288_v17  ;;  %v203_v32 = vadd.f32 %v187_v26, %v171_v60  ;;  %v1027_v36 = vld [vmem:[#allocation22_spill] sm:$0xff] }
  0x30   :  { %v219_v22 = vmul.f32 %v1019_v29, %v1019_v29  ;;  %v233_v44 = vadd.f32 %v217_v13, %v201_v25  ;;  %v293_v45 = vsel %vm244_vm1, %v231_v37, 0.0  ;;  %v174_v33 = vadd.f32 %v825_v62, %v1020_v28  ;;  %v1025_v13 = vld [vmem:[#allocation24_spill] sm:$0xff] }
  0x31   :  { %v278_v47 = vrot.slane %v277_v2, 2  ;;  %v190_v40 = vmul.f32 %v1021_v34, %v1021_v34  ;;  %v292_v24 = vadd.f32 %v291_v14, %v290_v52  ;;  %v204_v56 = vadd.f32 %v188_v43, %v172_v9 }
  0x32   :  { %v220_v11 = vmul.f32 %v1022_v3, %v1022_v3  ;;  %v234_v7 = vadd.f32 %v218_v8, %v202_v27  ;;  %v295_v1 = vsel %vm244_vm1, %v232_v35, 0.0  ;;  %v175_v57 = vadd.f32 %v841_v51, %v1023_v0  ;;  %v243_v51 = vld [vmem:[#allocation2] sm:$0x1]  ;;  %v1028_v27 = vld [vmem:[#allocation17_spill] sm:$0xff] }
  0x33   :  { %v279_v5 = vadd.f32 %v278_v47, %v277_v2  ;;  %v191_v61 = vmul.f32 %v747_v49, %v747_v49  ;;  %v294_v41 = vadd.f32 %v293_v45, %v292_v24  ;;  %v205_v62 = vadd.f32 %v189_v63, %v173_v20  ;;  %v1029_v8 = vld [vmem:[#allocation23_spill] sm:$0xff] }
  0x34   :  { %v221_v60 = vmul.f32 %v766_v23, %v766_v23  ;;  %v235_v58 = vadd.f32 %v219_v22, %v203_v32  ;;  %v297_v54 = vsel %vm244_vm1, %v233_v44, 0.0  ;;  %v176_v4 = vadd.f32 %v865_v21, %v1024_v55 }
  0x35   :  { %v280_v42 = vrot.slane %v279_v5, 1  ;;  %v192_v26 = vmul.f32 %v752_v50, %v752_v50  ;;  %v296_v25 = vadd.f32 %v295_v1, %v294_v41  ;;  %v206_v31 = vadd.f32 %v190_v40, %v174_v33 }
  0x36   :  { %v222_v49 = vmul.f32 %v1025_v13, %v1025_v13  ;;  %v236_v37 = vadd.f32 %v220_v11, %v204_v56  ;;  %v299_v59 = vsel %vm244_vm1, %v234_v7, 0.0  ;;  %v177_v6 = vadd.f32 %v869_v30, %v1026_v12 }
  0x37   :  { %v281_v23 = vadd.f32 %v280_v42, %v279_v5  ;;  %v193_v21 = vmul.f32 %v1027_v36, %v1027_v36  ;;  %v298_v19 = vadd.f32 %v297_v54, %v296_v25  ;;  %v207_v50 = vadd.f32 %v191_v61, %v175_v57 }
  0x38   :  { %v223_v9 = vmul.f32 %v796_v48, %v796_v48  ;;  %v237_v16 = vadd.f32 %v221_v60, %v205_v62  ;;  %v301_v43 = vsel %vm244_vm1, %v235_v58, 0.0  ;;  %v178_v15 = vadd.f32 %v883_v39, %v1028_v27 }
  0x39   :  { %v282_v17 = vadd.f32 %v281_v23, %v243_v51  ;;  %v194_v35 = vmul.f32 %v1029_v8, %v1029_v8  ;;  %v300_v14 = vadd.f32 %v299_v59, %v298_v19  ;;  %v208_v30 = vadd.f32 %v192_v26, %v176_v4 }
  0x3a   :  { %v224_v2 = vmul.f32 %v801_v10, %v801_v10  ;;  %v238_v38 = vadd.f32 %v222_v49, %v206_v31  ;;  %v303_v20 = vsel %vm244_vm1, %v236_v37, 0.0  ;;  %v209_v46 = vadd.f32 %v193_v21, %v177_v6 }
  0x3b   :  { %284 = vst.msk [vmem:[#allocation2] sm:$0x1] %vm16_vm0, %v282_v17  ;;  %v302_v48 = vadd.f32 %v301_v43, %v300_v14  ;;  %v225_v63 = vmul.f32 %v813_v53, %v813_v53  ;;  %v239_v39 = vadd.f32 %v223_v9, %v207_v50  ;;  %v305_v52 = vsel %vm244_vm1, %v237_v16, 0.0 }
  0x3c   :  { %367 = shalt.err (!%p364_p4)
}
  0x3d   :  { %s368_s30 = scalar_lea.hbm %s984_s1, 16 }
  0x3e   :  { %p369_p5 = scmp.ne.s32.totalorder %s984_s1, %s368_s30  ;;  %p372_p6 = scmp.lt.u32.totalorder %s368_s30, %s984_s1 }
  0x40   :  { %p374_p7 = pnand %p372_p6, %p369_p5 }
  0x42   :  { %377 = shalt.err (!%p374_p7)
}
  0x43   :  { %334 = dma.vmem_to_hbm [thread:$0]  %s332_s25, 16, %s984_s1, [#allocation3]   ;;  %v304_v10 = vadd.f32 %v303_v20, %v302_v48  ;;  %v210_v53 = vadd.f32 %v194_v35, %v178_v15  ;;  %v226_v32 = vmul.f32 %v836_v18, %v836_v18  ;;  %v240_v29 = vadd.f32 %v224_v2, %v208_v30  ;;  %v285_v61 = vld [vmem:[#allocation4] sm:$0x1] }
  0x44   :  { %v307_v22 = vsel %vm244_vm1, %v238_v38, 0.0  ;;  %v241_v45 = vadd.f32 %v225_v63, %v209_v46  ;;  %v309_v47 = vsel %vm244_vm1, %v239_v39, 0.0  ;;  %s406_s1 = smov [#allocation4]  }
  0x45   :  { %v306_v44 = vadd.f32 %v305_v52, %v304_v10  ;;  %v242_v33 = vadd.f32 %v226_v32, %v210_v53  ;;  %v311_v34 = vsel %vm244_vm1, %v240_v29, 0.0  ;;  %s341_s9 = sshll.u32 %s406_s1, 4  ;;  %s342_s9 = int_to_ptr.vmem [resolvable:$true] %s341_s9 }
  0x46   :  { %v313_v24 = vsel %vm244_vm1, %v241_v45, 0.0  ;;  %s378_s10 = scalar_lea.vmem %s342_s9, 16  ;;  %s382_s11 = scalar_lea.vmem %s342_s9, 32 }
  0x47   :  { %v308_v28 = vadd.f32 %v307_v22, %v306_v44  ;;  %v315_v3 = vsel %vm244_vm1, %v242_v33, 0.0  ;;  %p379_p8 = scmp.ne.s32.totalorder %s342_s9, %s378_s10  ;;  %p383_p9 = scmp.lt.s32.totalorder %s342_s9, %s342_s9 }
  0x48   :  { %p384_p10 = scmp.lt.s32.totalorder %s382_s11, %s378_s10 }
  0x49   :  { %v310_v40 = vadd.f32 %v309_v47, %v308_v28 }
  0x4a   :  { %p385_p11 = por %p384_p10, %p383_p9 }
  0x4b   :  { %v312_v56 = vadd.f32 %v311_v34, %v310_v40 }
  0x4c   :  { %p386_p12 = pnand %p385_p11, %p379_p8 }
  0x4d   :  { %v314_v11 = vadd.f32 %v313_v24, %v312_v56 }
  0x4f   :  { %v316_v7 = vadd.f32 %v315_v3, %v314_v11 }
  0x51   :  { %v317_v18 = vrot.slane %v316_v7, 4 }
  0x53   :  { %v318_v1 = vadd.f32 %v317_v18, %v316_v7 }
  0x55   :  { %v319_v5 = vrot.slane %v318_v1, 2 }
  0x57   :  { %v320_v0 = vadd.f32 %v319_v5, %v318_v1 }
  0x59   :  { %v321_v57 = vrot.slane %v320_v0, 1 }
  0x5b   :  { %v322_v41 = vadd.f32 %v321_v57, %v320_v0 }
  0x5d   :  { %v323_v62 = vadd.f32 %v322_v41, %v285_v61 }
  0x5f   :  { %324 = vst.msk [vmem:[#allocation4] sm:$0x1] %vm16_vm0, %v323_v62 }
  0x60   :  { %389 = shalt.err (!%p386_p12)
}
  0x61   :  { %s390_s14 = scalar_lea.hbm %s985_s2, 16 }
  0x62   :  { %p391_p13 = scmp.ne.s32.totalorder %s985_s2, %s390_s14  ;;  %p394_p0 = scmp.lt.u32.totalorder %s390_s14, %s985_s2 }
  0x64   :  { %p396_p1 = pnand %p394_p0, %p391_p13 }
  0x66   :  { %399 = shalt.err (!%p396_p1)
}
  0x67   :  { %344 = dma.vmem_to_hbm [thread:$0]  %s342_s9, 16, %s985_s2, [#allocation5]  }
  0x68   :  { %400 = dma.done.wait [#allocation3], 16  }
  0x69   :  { %401 = vsyncadd [#allocation3], 4294967280 }
  0x6a   :  { %402 = dma.done.wait [#allocation5], 16  }
  0x6b   :  { %403 = vsyncadd [#allocation5], 4294967280 }
  0x6c   :  { %351 = vsyncpa [#allocation3], 1 }
  0x6d   :  { %352 = vsyncpa [#allocation5], 1 }

</bundles_post_ra>
